<compile_context>
chip_gen: v5e
topology: v5e:2x2
jax: 0.10.0
libtpu: 0.0.40
codegen_flags: <defaults>
</compile_context>

<pallas_src>
import functools

import jax
import jax.numpy as jnp
import numpy as np
from jax import lax
from jax.experimental import pallas as pl
from jax.experimental.pallas import tpu as pltpu


def _round_up(x, m):
    return ((x + m - 1) // m) * m


def _conv1d_half_kernel(xc_ref, xn_ref, w_ref, o_ref, slab_ref, *, k, dilation):
    # xc_ref  : (1, C_in, TL)     current input tile (lane axis = length)
    # xn_ref  : (1, C_in, TL)     next input tile (halo source)
    # w_ref   : (C_out, K*C_in)   fused "im2col" weight, rows ordered (tap, channel)
    # o_ref   : (1, C_out, TL)    dense (stride-1) output tile, lane-dense
    # slab_ref: (K*C_in, TL)      VMEM scratch holding the im2col slab
    c_in = xc_ref.shape[1]
    tl = o_ref.shape[2]

    # Build the im2col slab: row block j holds the input shifted left by j*dilation.
    # All slices are static; the shift never exceeds TL (wrapper guarantees 2*halo<=TL),
    # so at most the tail spills into the "next" tile.
    for j in range(k):
        off = j * dilation
        r0, r1 = j * c_in, (j + 1) * c_in
        if off == 0:
            slab_ref[r0:r1, :] = xc_ref[0]
        else:
            slab_ref[r0:r1, : tl - off] = xc_ref[0, :, off:]
            slab_ref[r0:r1, tl - off:] = xn_ref[0, :, :off]

    # One wide-contraction MXU matmul (contraction = K*C_in), native-dtype operands,
    # f32 accumulation.  Output (C_out, TL) is stored lane-dense.
    o_ref[0] = jnp.dot(
        w_ref[...], slab_ref[...], preferred_element_type=jnp.float32
    ).astype(o_ref.dtype)


def conv1d_half(x, weight, *, stride=1, dilation=1, max_tile_l=512):
    """x: (B, C_in, L) NCL; weight: (C_out, C_in, K) half-kernel.

    Returns (B, C_out, L_out), matching Conv1DHalf.forward.
    """
    b, c_in, l = x.shape
    c_out, c_in_w, k = weight.shape
    assert c_in_w == c_in and k >= 2
    fk = (k - 1) * 2 + 1                                   # full (zero-padded) kernel
    pad = ((l - 1) * (stride - 1) + dilation * (fk - 1)) // 2   # _get_same_padding
    l_pad = l + 2 * pad
    l_out = (l_pad - dilation * (fk - 1) - 1) // stride + 1
    l_dense = l_pad - dilation * (fk - 1)                  # stride-1 output length
    halo = dilation * (k - 1)                              # extra input cols per tile

    # L tile: multiple of 128 (lane-aligned, unmasked stores), at least 2*halo so a
    # single "next" block covers the halo, capped so x/out blocks + double buffering
    # stay well inside v7x's 64 MiB VMEM.
    tl = min(max_tile_l, _round_up(max(l_dense, 1), 128))
    tl = max(tl, _round_up(max(2 * halo, 1), 128))
    n_l = -(-l_dense // tl)                                # ceil
    l_in_k = (n_l + 1) * tl                                # +1 tile of halo/alignment

    # Single wrapper-side pad: left "same" zeros + right zeros for tile alignment.
    # No transposes — the kernel works directly in NCL.
    x_kin = jnp.pad(x, ((0, 0), (0, 0), (pad, l_in_k - l - pad)))

    # Fused weight: (C_out, K*C_in), rows ordered (tap, channel) to match the slab.
    w_flat = jnp.transpose(weight, (0, 2, 1)).reshape(c_out, k * c_in).astype(x.dtype)

    out_dense = pl.pallas_call(
        functools.partial(_conv1d_half_kernel, k=k, dilation=dilation),
        out_shape=jax.ShapeDtypeStruct((b, c_out, n_l * tl), x.dtype),
        grid=(b, n_l),
        in_specs=[
            pl.BlockSpec((1, c_in, tl), lambda bi, li: (bi, 0, li)),      # current tile
            pl.BlockSpec((1, c_in, tl), lambda bi, li: (bi, 0, li + 1)),  # halo tile
            pl.BlockSpec((c_out, k * c_in), lambda bi, li: (0, 0)),       # fused weight
        ],
        out_specs=pl.BlockSpec((1, c_out, tl), lambda bi, li: (bi, 0, li)),
        scratch_shapes=[pltpu.VMEM((k * c_in, tl), x.dtype)],
        compiler_params=pltpu.CompilerParams(
            dimension_semantics=("parallel", "parallel")
        ),
    )(x_kin, x_kin, w_flat)

    if stride == 1:
        return out_dense if n_l * tl == l_out else out_dense[:, :, :l_out]
    # TODO(synk): fold stride>1 into the in-kernel slab (contiguous loads) instead of
    # computing the dense result and decimating it in the wrapper.
    return out_dense[:, :, : (l_out - 1) * stride + 1 : stride]


def _reference_conv1d_half(x, weight, *, stride=1, dilation=1):
    """Pure-JAX reference reproducing F.conv1d(cat(W, zeros), padding, dilation)."""
    c_out, c_in, k = weight.shape
    fk = (k - 1) * 2 + 1
    w_full = jnp.concatenate(
        [weight, jnp.zeros((c_out, c_in, k - 1), weight.dtype)], axis=-1
    )
    l = x.shape[-1]
    pad = ((l - 1) * (stride - 1) + dilation * (fk - 1)) // 2
    return lax.conv_general_dilated(
        x, w_full,
        window_strides=(stride,),
        padding=[(pad, pad)],
        rhs_dilation=(dilation,),
        dimension_numbers=("NCH", "OIH", "NCH"),
    )


if __name__ == "__main__":
    # Small shapes consistent with the module: batch=2, in_chan=4, length=16,
    # out_chan=8, (half) kernel=3 -> full_kernel=5, padding=2, L_out=16.
    B, C_IN, L = 2, 4, 16
    C_OUT, K = 8, 3
    STRIDE, DILATION = 1, 1

    key = jax.random.PRNGKey(0)
    k_x, k_w = jax.random.split(key)
    x = jax.random.normal(k_x, (B, C_IN, L), dtype=jnp.float32)

    # Deterministic kaiming_normal_(a=0, mode='fan_in', nonlinearity='leaky_relu'):
    # std = sqrt(2 / fan_in), fan_in = in_chan * kernel
    fan_in = C_IN * K
    std = float(np.sqrt(2.0 / fan_in))
    weight = jax.random.normal(k_w, (C_OUT, C_IN, K), dtype=jnp.float32) * std

    out = jax.block_until_ready(
        conv1d_half(x, weight, stride=STRIDE, dilation=DILATION)
    )
    ref = jax.block_until_ready(
        _reference_conv1d_half(x, weight, stride=STRIDE, dilation=DILATION)
    )
    assert out.shape == ref.shape == (B, C_OUT, L)
    np.testing.assert_allclose(np.asarray(out), np.asarray(ref), rtol=1e-5, atol=1e-5)

    print("KERNEL_OK")
</pallas_src>

<mosaic_0001>
module attributes {stable_mosaic.version = 11 : i64} {
  func.func @_conv1d_half_kernel(%arg0: i32, %arg1: i32, %arg2: memref<1x4x128xf32, #tpu.memory_space<vmem>>, %arg3: memref<1x4x128xf32, #tpu.memory_space<vmem>>, %arg4: memref<8x12xf32, #tpu.memory_space<vmem>>, %arg5: memref<1x8x128xf32, #tpu.memory_space<vmem>>, %arg6: memref<12x128xf32, #tpu.memory_space<vmem>>) attributes {dimension_semantics = [#tpu.dimension_semantics<parallel>, #tpu.dimension_semantics<parallel>], iteration_bounds = array<i64: 2, 1>, scalar_prefetch = 0 : i64, scratch_operands = 1 : i64, tpu.core_type = #tpu.core_type<tc>, window_params = [{transform_indices = @transform_0, window_bounds = array<i64: 1, 4, 128>}, {transform_indices = @transform_1, window_bounds = array<i64: 1, 4, 128>}, {pipeline_mode = #tpu.pipeline_mode<synchronous>, transform_indices = @transform_2, window_bounds = array<i64: 8, 12>}, {transform_indices = @transform_3, window_bounds = array<i64: 1, 8, 128>}]} {
    %c0 = arith.constant 0 : index
    %c0_0 = arith.constant 0 : index
    %c0_1 = arith.constant 0 : index
    %0 = vector.load %arg2[%c0, %c0_0, %c0_1] : memref<1x4x128xf32, #tpu.memory_space<vmem>>, vector<1x4x128xf32>
    %1 = vector.shape_cast %0 : vector<1x4x128xf32> to vector<4x128xf32>
    %c0_2 = arith.constant 0 : index
    %c0_3 = arith.constant 0 : index
    %2 = vector.load %arg6[%c0_2, %c0_3] : memref<12x128xf32, #tpu.memory_space<vmem>>, vector<4x128xf32>
    tpu.vector_store %arg6[%c0_2, %c0_3], %1 {strides = array<i32>} : memref<12x128xf32, #tpu.memory_space<vmem>>, vector<4x128xf32>,
    %c0_4 = arith.constant 0 : index
    %c0_5 = arith.constant 0 : index
    %c1 = arith.constant 1 : index
    %3 = vector.load %arg2[%c0_4, %c0_5, %c1] : memref<1x4x128xf32, #tpu.memory_space<vmem>>, vector<1x4x127xf32>
    %4 = vector.shape_cast %3 : vector<1x4x127xf32> to vector<4x127xf32>
    %c4 = arith.constant 4 : index
    %c0_6 = arith.constant 0 : index
    %5 = vector.load %arg6[%c4, %c0_6] : memref<12x128xf32, #tpu.memory_space<vmem>>, vector<4x127xf32>
    tpu.vector_store %arg6[%c4, %c0_6], %4 {strides = array<i32>} : memref<12x128xf32, #tpu.memory_space<vmem>>, vector<4x127xf32>,
    %c0_7 = arith.constant 0 : index
    %c0_8 = arith.constant 0 : index
    %c0_9 = arith.constant 0 : index
    %6 = vector.load %arg3[%c0_7, %c0_8, %c0_9] : memref<1x4x128xf32, #tpu.memory_space<vmem>>, vector<1x4x1xf32>
    %7 = vector.shape_cast %6 : vector<1x4x1xf32> to vector<4x1xf32>
    %c4_10 = arith.constant 4 : index
    %c127 = arith.constant 127 : index
    %8 = vector.load %arg6[%c4_10, %c127] : memref<12x128xf32, #tpu.memory_space<vmem>>, vector<4x1xf32>
    tpu.vector_store %arg6[%c4_10, %c127], %7 {strides = array<i32>} : memref<12x128xf32, #tpu.memory_space<vmem>>, vector<4x1xf32>,
    %c0_11 = arith.constant 0 : index
    %c0_12 = arith.constant 0 : index
    %c2 = arith.constant 2 : index
    %9 = vector.load %arg2[%c0_11, %c0_12, %c2] : memref<1x4x128xf32, #tpu.memory_space<vmem>>, vector<1x4x126xf32>
    %10 = vector.shape_cast %9 : vector<1x4x126xf32> to vector<4x126xf32>
    %c8 = arith.constant 8 : index
    %c0_13 = arith.constant 0 : index
    %11 = vector.load %arg6[%c8, %c0_13] : memref<12x128xf32, #tpu.memory_space<vmem>>, vector<4x126xf32>
    tpu.vector_store %arg6[%c8, %c0_13], %10 {strides = array<i32>} : memref<12x128xf32, #tpu.memory_space<vmem>>, vector<4x126xf32>,
    %c0_14 = arith.constant 0 : index
    %c0_15 = arith.constant 0 : index
    %c0_16 = arith.constant 0 : index
    %12 = vector.load %arg3[%c0_14, %c0_15, %c0_16] : memref<1x4x128xf32, #tpu.memory_space<vmem>>, vector<1x4x2xf32>
    %13 = vector.shape_cast %12 : vector<1x4x2xf32> to vector<4x2xf32>
    %c8_17 = arith.constant 8 : index
    %c126 = arith.constant 126 : index
    %14 = vector.load %arg6[%c8_17, %c126] : memref<12x128xf32, #tpu.memory_space<vmem>>, vector<4x2xf32>
    tpu.vector_store %arg6[%c8_17, %c126], %13 {strides = array<i32>} : memref<12x128xf32, #tpu.memory_space<vmem>>, vector<4x2xf32>,
    %c0_18 = arith.constant 0 : index
    %c0_19 = arith.constant 0 : index
    %15 = vector.load %arg4[%c0_18, %c0_19] : memref<8x12xf32, #tpu.memory_space<vmem>>, vector<8x12xf32>
    %c0_20 = arith.constant 0 : index
    %c0_21 = arith.constant 0 : index
    %16 = vector.load %arg6[%c0_20, %c0_21] : memref<12x128xf32, #tpu.memory_space<vmem>>, vector<12x128xf32>
    %cst = arith.constant dense<0.000000e+00> : vector<8x128xf32>
    %17 = tpu.matmul %15, %16, %cst {dimension_numbers = #tpu.dot_dimension_numbers<[1], [0], [0], [1], [0, 0, 1, 1], [], []>} : vector<8x12xf32>, vector<12x128xf32>, vector<8x128xf32> -> vector<8x128xf32>
    %c0_22 = arith.constant 0 : index
    %c0_23 = arith.constant 0 : index
    %c0_24 = arith.constant 0 : index
    %18 = vector.load %arg5[%c0_22, %c0_23, %c0_24] : memref<1x8x128xf32, #tpu.memory_space<vmem>>, vector<1x8x128xf32>
    %19 = vector.shape_cast %18 : vector<1x8x128xf32> to vector<8x128xf32>
    %20 = vector.shape_cast %17 : vector<8x128xf32> to vector<1x8x128xf32>
    tpu.vector_store %arg5[%c0_22, %c0_23, %c0_24], %20 {strides = array<i32>} : memref<1x8x128xf32, #tpu.memory_space<vmem>>, vector<1x8x128xf32>,
    return
  }
  func.func @transform_0(%arg0: i32, %arg1: i32) -> (i32, i32, i32) {
    %c0_i32 = arith.constant 0 : i32
    %c0_i32_0 = arith.constant 0 : i32
    return %arg0, %c0_i32, %arg1 : i32, i32, i32
  }
  func.func @transform_1(%arg0: i32, %arg1: i32) -> (i32, i32, i32) {
    %c1_i32 = arith.constant 1 : i32
    %0 = arith.addi %arg1, %c1_i32 : i32
    %c0_i32 = arith.constant 0 : i32
    %c0_i32_0 = arith.constant 0 : i32
    return %arg0, %c0_i32, %0 : i32, i32, i32
  }
  func.func @transform_2(%arg0: i32, %arg1: i32) -> (i32, i32) {
    %c0_i32 = arith.constant 0 : i32
    %c0_i32_0 = arith.constant 0 : i32
    %c0_i32_1 = arith.constant 0 : i32
    return %c0_i32, %c0_i32_0 : i32, i32
  }
  func.func @transform_3(%arg0: i32, %arg1: i32) -> (i32, i32, i32) {
    %c0_i32 = arith.constant 0 : i32
    %c0_i32_0 = arith.constant 0 : i32
    return %arg0, %c0_i32, %arg1 : i32, i32, i32
  }
}

</mosaic_0001>

<bundles_post_ra>
// kernel: tpu_custom_call.1
= control target key start
LH: loop header
LB: loop body
LE: loop exit
PB: predicated region body
PF: predicated region fallthrough
CT: control target
= control target key end

     0   :  { %s926_s0 = inlined_call_operand.hbm [shape: f32[2,4,256], index: 0, kind: input, shape index: {}]   ;;  %s927_s1 = inlined_call_operand.hbm [shape: f32[2,4,256], index: 1, kind: input, shape index: {}]   ;;  %s928_s2 = inlined_call_operand.hbm [shape: f32[8,12], index: 2, kind: input, shape index: {}]   ;;  %s929_s3 = inlined_call_operand.hbm [shape: f32[2,8,128], index: 3, kind: output, shape index: {}]  }
   0x1   :  { %933 = sst [smem:[#allocation18_spill]] %s928_s2 }
   0x2   :  { %8 = vsyncpa [#allocation4], 0 }
   0x3   :  { %10 = vsyncpa [#allocation4 + $0x1], 0 }
   0x4   :  { %11 = vsyncpa [#allocation7], 0 }
   0x5   :  { %13 = vsyncpa [#allocation7 + $0x1], 0 }
   0x6   :  { %14 = vsyncpa [#allocation5], 0 }
   0x7   :  { %16 = vsyncpa [#allocation5 + $0x1], 0  ;;  %s771_s12 = smov 0   ;;  %s773_s13 = smov 0  }
   0x8   :  { %s775_s14 = smov 0   ;;  %s777_s15 = smov 0  }
   0x9   :  { %s779_s16 = smov 0   ;;  %s781_s17 = smov 0  }
   0xa LB: > { %934 = sst [smem:[#allocation14_spill]] %s734_s14  ;;  %s802_s18 = sadd.s32 4294967295, %s746_s17   ;;  %s746_s17 = sphi %s781_s17, %s22_s17   ;;  %s742_s16 = sphi %s779_s16, %s947_s16   ;;  %s738_s15 = sphi %s777_s15, %s946_s15   ;;  %s734_s14 = sphi %s775_s14, %s945_s14   ;;  %s730_s13 = sphi %s773_s13, %s949_s13   ;;  %s726_s12 = sphi %s771_s12, %s948_s12  }
   0xb   : > { %935 = sst [smem:[#allocation15_spill]] %s742_s16  ;;  %s463_s19 = sadd.s32 4294967294, %s746_s17  }
   0xc   : > { %p56_p0 = scmp.ne.s32.totalorder %s730_s13, %s726_s12  ;;  %p57_p1 = scmp.eq.s32.totalorder %s802_s18, 0 }
   0xd   : > { %p133_p2 = scmp.eq.s32.totalorder %s802_s18, 1  ;;  %p139_p3 = scmp.eq.s32.totalorder %s463_s19, 1 }
   0xe   : > { %p811_p4 = por %p57_p1, %p56_p0  ;;  %p464_p5 = scmp.ge.s32.totalorder %s746_s17, 1 }
   0xf   : > { %p816_p6 = por %p139_p3, %p56_p0  ;;  %p146_p7 = scmp.lt.s32.totalorder %s746_s17, 3 }
  0x10   : > { %s938_s2 = sld [smem:[#allocation18_spill]]  ;;  %p466_p9 = scmp.ge.s32.totalorder %s746_s17, 2 }
  0x11   : > { %p824_p8 = pnand %p464_p5, %p146_p7  ;;  %s748_s26 = smov [#allocation8]  }
  0x12   : > { %s160_s27 = sshll.u32 %s748_s26, 4  ;;  %s34_s28 = sadd.s32 1, %s742_s16  ;;  %s161_s27 = int_to_ptr.vmem [resolvable:$true] %s160_s27 }
  0x13   : > { %p496_p10 = pneg %p824_p8  ;;  %p36_p12 = scmp.ge.s32.totalorder %s34_s28, 2 }
  0x14   : > { %s43_s29 = sadd.s32 1, %s734_s14  ;;  %p50_p13 = scmp.ne.s32.totalorder %s734_s14, %s730_s13 }
  0x15   : > { %p497_p11 = pnand %p496_p10, %p57_p1  ;;  %p51_p0 = scmp.eq.s32.totalorder %s746_s17, 0 }
  0x16   : > { %s158_s24 = sshll.u32 %s938_s2, 4  ;;  %s951_s28 = smov (%p36_p12, %s34_s28), 0  ;;  %s159_s24 = int_to_ptr.hbm [resolvable:$true] %s158_s24 }
  0x17   : > { %499 = dma.hbm_to_vmem [thread:$0]  (!%p497_p11), %s159_s24, 128, %s161_s27, [#allocation7]  }
  0x18   : > { %940 = sst [smem:[#allocation16_spill]] %s951_s28  ;;  %p840_p3 = por %p51_p0, %p50_p13 }
  0x19   : > { %p846_p5 = por %p133_p2, %p50_p13  ;;  %s38_s5 = ssub.s32 %s742_s16, %s951_s28 }
  0x1a   : > { %p512_p7 = scmp.lt.s32.totalorder %s746_s17, 2  ;;  %p41_p10 = scmp.eq.s32.totalorder %s38_s5, 0 }
  0x1b   : > { %s171_s6 = sand.u32 1, %s734_s14   ;;  %s484_s9 = sshll.u32 %s742_s16, 3 }
  0x1c   : > { %s467_s7 = sshll.u32 %s171_s6, 2  ;;  %s181_s19 = scalar_lea.hbm %s926_s0, %s484_s9 }
  0x1d   : > { %s855_s8 = scalar_select %p41_p10, %s734_s14, %s43_s29  }
  0x1e   : > { %s175_s22 = scalar_lea.vmem [#allocation3], %s467_s7  ;;  %s183_s24 = sshll.u32 %s181_s19, 4  ;;  %s184_s24 = int_to_ptr.hbm [resolvable:$true] %s183_s24 }
  0x1f   : > { %943 = sst [smem:[#allocation17_spill]] %s855_s8  ;;  %s185_s23 = sshll.u32 %s175_s22, 4  ;;  %s186_s23 = int_to_ptr.vmem [resolvable:$true] %s185_s23 }
  0x20   : > { %p501_p2 = pnand %p512_p7, %p840_p3  ;;  %s386_s5 = scalar_lea.hbm %s927_s1, %s484_s9 }
  0x21   : > { %s192_s2 = sand.u32 1, %s746_s17   ;;  %s172_s28 = scalar_lea.sflag [#allocation4], %s171_s6 }
  0x22   : > { %503 = dma.hbm_to_vmem [thread:$0]  (!%p501_p2), %s184_s24, 64, %s186_s23, %s172_s28  }
  0x23   : > { %s387_s29 = scalar_lea.hbm %s386_s5, 4  ;;  %s196_s8 = scalar_lea.vmem [#allocation6], %s467_s7 }
  0x24   : > { %s205_s16 = sshll.u32 %s387_s29, 4  ;;  %s207_s14 = sshll.u32 %s196_s8, 4  ;;  %s206_s16 = int_to_ptr.hbm [resolvable:$true] %s205_s16  ;;  %s208_s14 = int_to_ptr.vmem [resolvable:$true] %s207_s14 }
  0x25   : > { %s193_s10 = scalar_lea.sflag [#allocation7], %s192_s2  ;;  %216 = sbr.rel (%p824_p8) target bundleno = 312 (0x138), region = 32 }
  0x26   : > { %506 = dma.hbm_to_vmem [thread:$0]  (!%p501_p2), %s206_s16, 64, %s208_s14, %s193_s10  }
  0x27   : > { %s870_s30 = sand.u32 (!%p824_p8), 1, %s730_s13  }
  0x28   : > { %s474_s9 = sshll.u32 (!%p824_p8), %s870_s30, 2  ;;  %s219_s6 = scalar_lea.sflag (!%p824_p8), [#allocation4], %s870_s30 }
  0x29   : > { %s222_s28 = scalar_lea.vmem (!%p824_p8), [#allocation3], %s474_s9 }
  0x2a   : > { %709 = dma.done.wait (%p811_p4), %s219_s6, 64  }
  0x2b   : > { %711 = vsyncadd (%p811_p4), %s219_s6, 4294967232  ;;  %s228_s2 = sand.u32 1, %s802_s18   ;;  %s232_s16 = scalar_lea.vmem [#allocation6], %s474_s9 }
  0x2c   : > { %s229_s14 = scalar_lea.sflag [#allocation7], %s228_s2 }
  0x2d   : > { %713 = dma.done.wait (%p811_p4), %s229_s14, 64  }
  0x2e   : > { %715 = vsyncadd (%p811_p4), %s229_s14, 4294967232 }
  0x2f   : > { %717 = dma.done.wait (%p57_p1), [#allocation7], 128  }
  0x30   : > { %719 = vsyncadd (%p57_p1), [#allocation7], 4294967168  ;;  %v283_v0 = vld [vmem:[%s222_s28] sm:$0xf]  ;;  %s749_s25 = smov 126   ;;  %s750_s7 = smov 127  }
  0x31   : > { %v269_v1 = vld [vmem:[%s222_s28] sm:$0xf]  ;;  %285 = vrot.lane.b32.xlu0 %v283_v0, %s749_s25  ;;  %v290_v2 = vld [vmem:[%s232_s16] sm:$0xf]  ;;  %vm288_vm0 = vcmask 1027072   ;;  %vm274_vm1 = vcmask 1035264  }
  0x32   : > { %271 = vrot.lane.b32.xlu1 %v269_v1, %s750_s7  ;;  %v276_v3 = vld [vmem:[%s232_s16] sm:$0xf]  ;;  %v267_v4 = vld [vmem:[%s222_s28] sm:$0xf]  ;;  %vm295_vm2 = vcmask 1044464   ;;  %vm281_vm3 = vcmask 1044472  }
  0x33   : > { %268 = vst [vmem:[#allocation2] sm:$0xf] %v267_v4  ;;  %vm304_vm4 = vcmask 1043456   ;;  %v297_v11 = vld [vmem:[#allocation8] sm:$0xff]  ;;  %vm300_vm5 = vcmask 97280   ;;  %s477_s18 = sshll.u32 %s870_s30, 3 }
  0x34   : > { %s481_s20 = sshll.u32 %s738_s15, 3  ;;  %s265_s22 = scalar_lea.vmem [#allocation9], %s477_s18 }
  0x35   : > { %s341_s19 = scalar_lea.hbm %s929_s3, %s481_s20  ;;  %s343_s23 = sshll.u32 %s265_s22, 4  ;;  %s344_s23 = int_to_ptr.vmem [resolvable:$true] %s343_s23 }
  0x36   : > { %s345_s24 = sshll.u32 %s341_s19, 4  ;;  %s330_s26 = scalar_lea.sflag [#allocation5], %s870_s30  ;;  %s346_s24 = int_to_ptr.hbm [resolvable:$true] %s345_s24 }
  0x37   : > { %s670_s27 = sshra.s32 %s346_s24, 4  ;;  %s676_s10 = scalar_lea.hbm %s929_s3, 16  ;;  %s671_s27 = int_to_ptr.hbm [resolvable:$true] %s670_s27 }
  0x38   : > { %s672_s5 = scalar_lea.hbm %s671_s27, 8  ;;  %p677_p11 = scmp.lt.s32.totalorder %s671_s27, %s929_s3 }
  0x39   : > { %292 = vrot.lane.b32.xlu0 %v290_v2, %s749_s25  ;;  %p673_p1 = scmp.ne.s32.totalorder %s671_s27, %s672_s5  ;;  %p678_p12 = scmp.lt.s32.totalorder %s676_s10, %s672_s5 }
  0x3a   : > { %278 = vrot.lane.b32.xlu1 %v276_v3, %s750_s7 }
  0x3b   : > { %p674_p4 = pnand %p673_p1, %p846_p5  ;;  %p679_p13 = por %p678_p12, %p677_p11 }
  0x3d   : > { %p675_p8 = pneg %p674_p4 }
  0x3f   : > { %p680_p0 = pnand %p679_p13, %p675_p8 }
  0xa3   : > { %v286_v5 = vpop.permute.xlu0 %285 }
  0xa4   : > { %v272_v6 = vpop.permute.xlu1 %271  ;;  %289 = vst.msk [vmem:[#allocation2 + $0x8] sm:$0xf] %vm288_vm0, %v286_v5 }
  0xa5   : > { %275 = vst.msk [vmem:[#allocation2 + $0x4] sm:$0xf] %vm274_vm1, %v272_v6 }
  0xab   : > { %v293_v7 = vpop.permute.xlu0 %292 }
  0xac   : > { %v279_v8 = vpop.permute.xlu1 %278  ;;  %296 = vst.msk [vmem:[#allocation2 + $0x8] sm:$0xf] %vm295_vm2, %v293_v7 }
  0xad   : > { %282 = vst.msk [vmem:[#allocation2 + $0x4] sm:$0xf] %vm281_vm3, %v279_v8 }
  0xb3   : > { %v299_v9 = vld [vmem:[#allocation2 + $0x8] sm:$0xf] }
  0xb4   : > { %478 = vmatpush.msk.msra.mxu0 %vm304_vm4, %v299_v9  ;;  %v298_v10 = vld [vmem:[#allocation2] sm:$0xff] }
  0xb6   : > { %323 = vmatpush.msra.mxu0 %v298_v10 }
  0xb7   : > { %479 = vmatmul.msk.f32.vlgmr.msra.gmra.mxu0 %vm300_vm5, %v297_v11 }
 0x134   : > { %v325_v12 = vpop.f32.mrf.mxu0 }
 0x135   : > { %328 = vst [vmem:[%s265_s22] sm:$0xff] %v325_v12 }
 0x136   : > { %683 = shalt.err (!%p680_p0)
}
 0x137   : > { %494 = dma.vmem_to_hbm [thread:$0]  (%p846_p5), %s344_s23, 128, %s346_s24, %s330_s26  }
 0x138 PF: > { %s357_s30 = sand.u32 1, %s726_s12   ;;  %p508_p3 = pnand %p466_p9, %p816_p6 }
 0x139   : > { %s358_s28 = scalar_lea.sflag [#allocation5], %s357_s30 }
 0x13a   : > { %p509_p7 = pneg %p508_p3 }
 0x13c   : > { %721 = dma.done.wait (%p509_p7), %s358_s28, 128  }
 0x13d   : > { %723 = vsyncadd (%p509_p7), %s358_s28, 4294967168  ;;  %s22_s17 = sadd.s32 1, %s746_s17   ;;  %s944_s2 = sld [smem:[#allocation14_spill]] }
 0x13e   : > { %p19_p10 = scmp.ge.s32.totalorder %s22_s17, 4   ;;  %s945_s14 = sld [smem:[#allocation17_spill]] }
 0x13f   : > { %s946_s15 = sld [smem:[#allocation15_spill]]  ;;  %s948_s12 = smov %s730_s13 }
 0x140   : > { %s947_s16 = sld [smem:[#allocation16_spill]]  ;;  %21 = sbr.rel (!%p19_p10) target bundleno = 10 (0xa), region = 94 }
 0x143   : > { %s949_s13 = smov %s944_s2 }
 0x145   :  { %364 = vsyncpa [#allocation4], 1 }
 0x146   :  { %366 = vsyncpa [#allocation4 + $0x1], 1 }
 0x147   :  { %367 = vsyncpa [#allocation7], 1 }
 0x148   :  { %369 = vsyncpa [#allocation7 + $0x1], 1 }
 0x149   :  { %370 = vsyncpa [#allocation5], 1 }
 0x14a   :  { %372 = vsyncpa [#allocation5 + $0x1], 1 }

</bundles_post_ra>
